<compile_context>
chip_gen: v7x
topology: tpu7x:2x2x1
jax: 0.10.0
libtpu: 0.0.40
codegen_flags: <defaults>
</compile_context>

<pallas_src>
import numpy as np

import jax
import jax.numpy as jnp
from jax.experimental import pallas as pl
from jax.experimental.pallas import tpu as pltpu


# --------------------------------------------------------------------------- #
# Kernel
# --------------------------------------------------------------------------- #
def _likelihood_fc_kernel(
    x_ref,
    w1_ref, b1_ref,
    w2_ref, b2_ref,
    wh_ref, bh_ref,
    exp_scale_ref, exp_mask_ref, clamp_min_ref,
    out_ref,
):
    cd = w1_ref.dtype  # MXU compute dtype (bfloat16)

    # ---- core FC network: Linear -> ReLU, twice (dropout_prob = 0.0 -> no-op) ----
    x = x_ref[...].astype(cd)
    h = jnp.dot(x, w1_ref[...], preferred_element_type=jnp.float32) + b1_ref[...]
    h = jnp.maximum(h, 0.0)
    h = jnp.dot(h.astype(cd), w2_ref[...], preferred_element_type=jnp.float32) + b2_ref[...]
    h = jnp.maximum(h, 0.0)

    # ---- all four heads fused into one (h2, pad_out) matmul -> one lane slab ----
    y = jnp.dot(h.astype(cd), wh_ref[...], preferred_element_type=jnp.float32) + bh_ref[...]

    # Per-head activations via precomputed resident lane vectors:
    #   exp_scale: 0.5 on scale lanes, 1.0 elsewhere     (scale = exp(0.5*s))
    #   clamp_min: 1e-10 on rate lanes, 0.0 elsewhere    (rate  = max(exp(r), 1e-10))
    #   exp_mask : 1.0 on scale+rate lanes, 0.0 elsewhere
    t = jnp.maximum(jnp.exp(exp_scale_ref[...] * y), clamp_min_ref[...])
    out_ref[...] = jnp.where(exp_mask_ref[...] > 0.0, t, y)


# --------------------------------------------------------------------------- #
# One-time parameter packing (heads fused, bf16 weights, epilogue lane vectors)
# --------------------------------------------------------------------------- #
def pack_params(params, lengths, pad_to=8, compute_dtype=jnp.bfloat16):
    """Fuse the four head weights/biases into one lane-packed, zero-padded slab.

    Column layout: [loc | scale | logits | rate | zero padding].
    Weights are stored in `compute_dtype` (bf16) for the MXU; biases stay f32.
    """
    n_cont = lengths["cont"]
    n_bin = lengths["bin"]
    n_pois = lengths["poisson"]
    head_total = 2 * n_cont + n_bin + n_pois
    pad_out = max(pad_to, ((head_total + pad_to - 1) // pad_to) * pad_to)

    wh = jnp.concatenate(
        [params["w_loc"], params["w_scale"], params["w_bin"], params["w_pois"]], axis=1)
    bh = jnp.concatenate(
        [params["b_loc"], params["b_scale"], params["b_bin"], params["b_pois"]], axis=1)
    wh = jnp.pad(wh, ((0, 0), (0, pad_out - head_total)))
    bh = jnp.pad(bh, ((0, 0), (0, pad_out - head_total)))

    scale_start, scale_end = n_cont, 2 * n_cont
    logits_start, logits_end = 2 * n_cont, 2 * n_cont + n_bin
    rate_start, rate_end = logits_end, logits_end + n_pois

    lane = np.arange(pad_out)
    scale_lanes = (lane >= scale_start) & (lane < scale_end)
    rate_lanes = (lane >= rate_start) & (lane < rate_end)
    exp_scale = np.where(scale_lanes, 0.5, 1.0).astype(np.float32)[None, :]
    exp_mask = (scale_lanes | rate_lanes).astype(np.float32)[None, :]
    clamp_min = np.where(rate_lanes, 1e-10, 0.0).astype(np.float32)[None, :]

    return {
        "w1": params["w1"].astype(compute_dtype), "b1": params["b1"].astype(jnp.float32),
        "w2": params["w2"].astype(compute_dtype), "b2": params["b2"].astype(jnp.float32),
        "wh": wh.astype(compute_dtype), "bh": bh.astype(jnp.float32),
        "exp_scale": jnp.asarray(exp_scale),
        "exp_mask": jnp.asarray(exp_mask),
        "clamp_min": jnp.asarray(clamp_min),
        "pad_out": pad_out,
        "offsets": {
            "loc": (0, n_cont),
            "scale": (scale_start, scale_end),
            "logits": (logits_start, logits_end),
            "rate": (rate_start, rate_end),
        },
    }


def _choose_block_b(B, max_block=1024):
    """Largest batch tile: multiple of 8, divisor of B, <= max_block, and leaving
    >= 2 grid steps when possible (so both v7x TensorCores get work)."""
    if B <= 8 or B % 8 != 0:
        return B  # single step; block dim == full array dim is always legal
    cap = min(max_block, B)
    if B // cap < 2 and B >= 16:
        cap = B // 2
    best = None
    b = 8
    while b <= cap:
        if B % b == 0:
            best = b
        b += 8
    return best if best is not None else B


# --------------------------------------------------------------------------- #
# Forward wrapper
# --------------------------------------------------------------------------- #
def likelihood_fc_forward(x, packed, block_b=None):
    """Fused LikelihoodFC forward.

    Returns (slab, offsets): slab is the lane-packed (B, pad_out) f32 output
    [loc | scale | logits | rate | pad]; offsets gives static column ranges.
    Downstream consumers should index the slab directly instead of re-slicing
    it into four narrow HBM arrays.
    """
    B, in_dim = x.shape
    h1 = packed["w1"].shape[1]
    h2 = packed["w2"].shape[1]
    pad_out = packed["pad_out"]

    if block_b is None:
        block_b = _choose_block_b(B)
    assert B % block_b == 0, (B, block_b)

    grid = (B // block_b,)
    slab = pl.pallas_call(
        _likelihood_fc_kernel,
        out_shape=jax.ShapeDtypeStruct((B, pad_out), jnp.float32),
        grid_spec=pltpu.PrefetchScalarGridSpec(
            num_scalar_prefetch=0,
            grid=grid,
            in_specs=[
                pl.BlockSpec((block_b, in_dim), lambda i: (i, 0)),   # x: batch-tiled
                pl.BlockSpec((in_dim, h1), lambda i: (0, 0)),        # weights resident
                pl.BlockSpec((1, h1), lambda i: (0, 0)),
                pl.BlockSpec((h1, h2), lambda i: (0, 0)),
                pl.BlockSpec((1, h2), lambda i: (0, 0)),
                pl.BlockSpec((h2, pad_out), lambda i: (0, 0)),
                pl.BlockSpec((1, pad_out), lambda i: (0, 0)),
                pl.BlockSpec((1, pad_out), lambda i: (0, 0)),        # exp_scale
                pl.BlockSpec((1, pad_out), lambda i: (0, 0)),        # exp_mask
                pl.BlockSpec((1, pad_out), lambda i: (0, 0)),        # clamp_min
            ],
            out_specs=pl.BlockSpec((block_b, pad_out), lambda i: (i, 0)),
        ),
        compiler_params=pltpu.CompilerParams(
            # batch tiles are independent: shards across the 2 TCs on v7x
            dimension_semantics=("parallel",),
        ),
    )(
        x,
        packed["w1"], packed["b1"],
        packed["w2"], packed["b2"],
        packed["wh"], packed["bh"],
        packed["exp_scale"], packed["exp_mask"], packed["clamp_min"],
    )
    return slab, packed["offsets"]


def split_slab(slab, offsets):
    """Convenience splitter (verification / non-hot-path use only)."""
    o = offsets
    return {
        "cont": {"loc": slab[:, o["loc"][0]:o["loc"][1]],
                 "scale": slab[:, o["scale"][0]:o["scale"][1]]},
        "bin": {"logits": slab[:, o["logits"][0]:o["logits"][1]]},
        "poisson": {"rate": slab[:, o["rate"][0]:o["rate"][1]]},
    }


# --------------------------------------------------------------------------- #
# Init + references
# --------------------------------------------------------------------------- #
def init_params(key, in_dim, layer_dims, lengths):
    """Deterministic synthetic init. Weights stored as (in_features, out_features)."""
    h1, h2 = layer_dims
    keys = jax.random.split(key, 12)

    def lin(kw, kb, fan_in, fan_out):
        w = 0.1 * jax.random.normal(kw, (fan_in, fan_out), jnp.float32)
        b = 0.1 * jax.random.normal(kb, (1, fan_out), jnp.float32)
        return w, b

    w1, b1 = lin(keys[0], keys[1], in_dim, h1)
    w2, b2 = lin(keys[2], keys[3], h1, h2)
    w_loc, b_loc = lin(keys[4], keys[5], h2, lengths["cont"])
    w_scale, b_scale = lin(keys[6], keys[7], h2, lengths["cont"])
    w_bin, b_bin = lin(keys[8], keys[9], h2, lengths["bin"])
    w_pois, b_pois = lin(keys[10], keys[11], h2, lengths["poisson"])
    return dict(
        w1=w1, b1=b1, w2=w2, b2=b2,
        w_loc=w_loc, b_loc=b_loc,
        w_scale=w_scale, b_scale=b_scale,
        w_bin=w_bin, b_bin=b_bin,
        w_pois=w_pois, b_pois=b_pois,
    )


def reference_forward_f32(x, p):
    """Pure-JAX f32 reference mirroring the PyTorch module semantics exactly."""
    h = jnp.maximum(x @ p["w1"] + p["b1"], 0.0)
    h = jnp.maximum(h @ p["w2"] + p["b2"], 0.0)
    loc = h @ p["w_loc"] + p["b_loc"]
    scale = jnp.sqrt(jnp.exp(1.0 * (h @ p["w_scale"] + p["b_scale"])))
    logits = h @ p["w_bin"] + p["b_bin"]
    rate = jnp.maximum(jnp.exp(h @ p["w_pois"] + p["b_pois"]), 1e-10)
    return {"cont": {"loc": loc, "scale": scale},
            "bin": {"logits": logits},
            "poisson": {"rate": rate}}


def reference_forward_mirrored(x, packed, lengths):
    """Pure-JAX reference using the same bf16/f32 mixed precision as the kernel."""
    cd = packed["w1"].dtype
    h = jnp.dot(x.astype(cd), packed["w1"], preferred_element_type=jnp.float32) + packed["b1"]
    h = jnp.maximum(h, 0.0)
    h = jnp.dot(h.astype(cd), packed["w2"], preferred_element_type=jnp.float32) + packed["b2"]
    h = jnp.maximum(h, 0.0)
    y = jnp.dot(h.astype(cd), packed["wh"], preferred_element_type=jnp.float32) + packed["bh"]
    o = packed["offsets"]
    loc = y[:, o["loc"][0]:o["loc"][1]]
    scale = jnp.exp(0.5 * y[:, o["scale"][0]:o["scale"][1]])
    logits = y[:, o["logits"][0]:o["logits"][1]]
    rate = jnp.maximum(jnp.exp(y[:, o["rate"][0]:o["rate"][1]]), 1e-10)
    return {"cont": {"loc": loc, "scale": scale},
            "bin": {"logits": logits},
            "poisson": {"rate": rate}}


# --------------------------------------------------------------------------- #
# Self-test
# --------------------------------------------------------------------------- #
if __name__ == "__main__":
    # Module config: in_dim=32, layer_dims=[32, 32], out_dim=8 with
    # likelihoods = ['cont','cont','cont','bin','bin','bin','poisson','poisson']
    # -> lengths: cont=3, bin=3, poisson=2.  Batch=128 -> block_b=64, grid=(2,).
    B, in_dim = 128, 32
    layer_dims = [32, 32]
    lengths = {"cont": 3, "bin": 3, "poisson": 2}

    key = jax.random.PRNGKey(0)
    kx, kp = jax.random.split(key)
    x = jax.random.normal(kx, (B, in_dim), jnp.float32)
    params = init_params(kp, in_dim, layer_dims, lengths)
    packed = pack_params(params, lengths)   # one-time: head fusion, bf16, lane vectors

    slab, offsets = likelihood_fc_forward(x, packed)
    slab = jax.block_until_ready(slab)
    out = split_slab(slab, offsets)         # verification-only split

    # Tight check against a reference using identical bf16/f32 mixed precision.
    ref_m = reference_forward_mirrored(x, packed, lengths)
    for lkl in ref_m:
        for name in ref_m[lkl]:
            assert out[lkl][name].shape == ref_m[lkl][name].shape, (lkl, name)
            assert jnp.allclose(out[lkl][name], ref_m[lkl][name],
                                atol=1e-3, rtol=1e-3), (lkl, name)

    # Loose check against the full-f32 PyTorch-equivalent semantics
    # (bounds the bf16 MXU quantization error).
    ref_f = reference_forward_f32(x, params)
    for lkl in ref_f:
        for name in ref_f[lkl]:
            assert jnp.allclose(out[lkl][name], ref_f[lkl][name],
                                atol=0.02, rtol=0.05), (lkl, name)

    print("KERNEL_OK")
</pallas_src>

<mosaic_0001>
module attributes {stable_mosaic.version = 11 : i64} {
  func.func @_likelihood_fc_kernel(%arg0: i32, %arg1: memref<64x32xf32, #tpu.memory_space<vmem>>, %arg2: memref<32x32xbf16, #tpu.memory_space<vmem>>, %arg3: memref<1x32xf32, #tpu.memory_space<vmem>>, %arg4: memref<32x32xbf16, #tpu.memory_space<vmem>>, %arg5: memref<1x32xf32, #tpu.memory_space<vmem>>, %arg6: memref<32x16xbf16, #tpu.memory_space<vmem>>, %arg7: memref<1x16xf32, #tpu.memory_space<vmem>>, %arg8: memref<1x16xf32, #tpu.memory_space<vmem>>, %arg9: memref<1x16xf32, #tpu.memory_space<vmem>>, %arg10: memref<1x16xf32, #tpu.memory_space<vmem>>, %arg11: memref<64x16xf32, #tpu.memory_space<vmem>>) attributes {dimension_semantics = [#tpu.dimension_semantics<parallel>], iteration_bounds = array<i64: 2>, scalar_prefetch = 0 : i64, scratch_operands = 0 : i64, tpu.core_type = #tpu.core_type<tc>, window_params = [{transform_indices = @transform_0, window_bounds = array<i64: 64, 32>}, {pipeline_mode = #tpu.pipeline_mode<synchronous>, transform_indices = @transform_1, window_bounds = array<i64: 32, 32>}, {pipeline_mode = #tpu.pipeline_mode<synchronous>, transform_indices = @transform_2, window_bounds = array<i64: 1, 32>}, {pipeline_mode = #tpu.pipeline_mode<synchronous>, transform_indices = @transform_3, window_bounds = array<i64: 32, 32>}, {pipeline_mode = #tpu.pipeline_mode<synchronous>, transform_indices = @transform_4, window_bounds = array<i64: 1, 32>}, {pipeline_mode = #tpu.pipeline_mode<synchronous>, transform_indices = @transform_5, window_bounds = array<i64: 32, 16>}, {pipeline_mode = #tpu.pipeline_mode<synchronous>, transform_indices = @transform_6, window_bounds = array<i64: 1, 16>}, {pipeline_mode = #tpu.pipeline_mode<synchronous>, transform_indices = @transform_7, window_bounds = array<i64: 1, 16>}, {pipeline_mode = #tpu.pipeline_mode<synchronous>, transform_indices = @transform_8, window_bounds = array<i64: 1, 16>}, {pipeline_mode = #tpu.pipeline_mode<synchronous>, transform_indices = @transform_9, window_bounds = array<i64: 1, 16>}, {transform_indices = @transform_10, window_bounds = array<i64: 64, 16>}]} {
    %c0 = arith.constant 0 : index
    %c0_0 = arith.constant 0 : index
    %0 = vector.load %arg1[%c0, %c0_0] : memref<64x32xf32, #tpu.memory_space<vmem>>, vector<64x32xf32>
    %1 = arith.truncf %0 : vector<64x32xf32> to vector<64x32xbf16>
    %c0_1 = arith.constant 0 : index
    %c0_2 = arith.constant 0 : index
    %2 = vector.load %arg2[%c0_1, %c0_2] : memref<32x32xbf16, #tpu.memory_space<vmem>>, vector<32x32xbf16>
    %cst = arith.constant dense<0.000000e+00> : vector<64x32xf32>
    %3 = tpu.matmul %1, %2, %cst {dimension_numbers = #tpu.dot_dimension_numbers<[1], [0], [0], [1], [0, 0, 1, 1], [], []>} : vector<64x32xbf16>, vector<32x32xbf16>, vector<64x32xf32> -> vector<64x32xf32>
    %c0_3 = arith.constant 0 : index
    %c0_4 = arith.constant 0 : index
    %4 = vector.load %arg3[%c0_3, %c0_4] : memref<1x32xf32, #tpu.memory_space<vmem>>, vector<1x32xf32>
    %5 = vector.broadcast %4 : vector<1x32xf32> to vector<64x32xf32>
    %6 = arith.addf %3, %5 : vector<64x32xf32>
    %cst_5 = arith.constant 0.000000e+00 : f32
    %7 = vector.broadcast %cst_5 : f32 to vector<64x32xf32>
    %8 = arith.maximumf %6, %7 : vector<64x32xf32>
    %9 = arith.truncf %8 : vector<64x32xf32> to vector<64x32xbf16>
    %c0_6 = arith.constant 0 : index
    %c0_7 = arith.constant 0 : index
    %10 = vector.load %arg4[%c0_6, %c0_7] : memref<32x32xbf16, #tpu.memory_space<vmem>>, vector<32x32xbf16>
    %cst_8 = arith.constant dense<0.000000e+00> : vector<64x32xf32>
    %11 = tpu.matmul %9, %10, %cst_8 {dimension_numbers = #tpu.dot_dimension_numbers<[1], [0], [0], [1], [0, 0, 1, 1], [], []>} : vector<64x32xbf16>, vector<32x32xbf16>, vector<64x32xf32> -> vector<64x32xf32>
    %c0_9 = arith.constant 0 : index
    %c0_10 = arith.constant 0 : index
    %12 = vector.load %arg5[%c0_9, %c0_10] : memref<1x32xf32, #tpu.memory_space<vmem>>, vector<1x32xf32>
    %13 = vector.broadcast %12 : vector<1x32xf32> to vector<64x32xf32>
    %14 = arith.addf %11, %13 : vector<64x32xf32>
    %cst_11 = arith.constant 0.000000e+00 : f32
    %15 = vector.broadcast %cst_11 : f32 to vector<64x32xf32>
    %16 = arith.maximumf %14, %15 : vector<64x32xf32>
    %17 = arith.truncf %16 : vector<64x32xf32> to vector<64x32xbf16>
    %c0_12 = arith.constant 0 : index
    %c0_13 = arith.constant 0 : index
    %18 = vector.load %arg6[%c0_12, %c0_13] : memref<32x16xbf16, #tpu.memory_space<vmem>>, vector<32x16xbf16>
    %cst_14 = arith.constant dense<0.000000e+00> : vector<64x16xf32>
    %19 = tpu.matmul %17, %18, %cst_14 {dimension_numbers = #tpu.dot_dimension_numbers<[1], [0], [0], [1], [0, 0, 1, 1], [], []>} : vector<64x32xbf16>, vector<32x16xbf16>, vector<64x16xf32> -> vector<64x16xf32>
    %c0_15 = arith.constant 0 : index
    %c0_16 = arith.constant 0 : index
    %20 = vector.load %arg7[%c0_15, %c0_16] : memref<1x16xf32, #tpu.memory_space<vmem>>, vector<1x16xf32>
    %21 = vector.broadcast %20 : vector<1x16xf32> to vector<64x16xf32>
    %22 = arith.addf %19, %21 : vector<64x16xf32>
    %c0_17 = arith.constant 0 : index
    %c0_18 = arith.constant 0 : index
    %23 = vector.load %arg8[%c0_17, %c0_18] : memref<1x16xf32, #tpu.memory_space<vmem>>, vector<1x16xf32>
    %24 = vector.broadcast %23 : vector<1x16xf32> to vector<64x16xf32>
    %25 = arith.mulf %24, %22 : vector<64x16xf32>
    %26 = math.exp %25 : vector<64x16xf32>
    %c0_19 = arith.constant 0 : index
    %c0_20 = arith.constant 0 : index
    %27 = vector.load %arg10[%c0_19, %c0_20] : memref<1x16xf32, #tpu.memory_space<vmem>>, vector<1x16xf32>
    %28 = vector.broadcast %27 : vector<1x16xf32> to vector<64x16xf32>
    %29 = arith.maximumf %26, %28 : vector<64x16xf32>
    %c0_21 = arith.constant 0 : index
    %c0_22 = arith.constant 0 : index
    %30 = vector.load %arg9[%c0_21, %c0_22] : memref<1x16xf32, #tpu.memory_space<vmem>>, vector<1x16xf32>
    %cst_23 = arith.constant 0.000000e+00 : f32
    %31 = vector.broadcast %cst_23 : f32 to vector<1x16xf32>
    %32 = arith.cmpf ogt, %30, %31 : vector<1x16xf32>
    %33 = vector.shape_cast %32 : vector<1x16xi1> to vector<1x16xi1>
    %34 = vector.broadcast %33 : vector<1x16xi1> to vector<64x16xi1>
    %35 = arith.select %34, %29, %22 : vector<64x16xi1>, vector<64x16xf32>
    %c0_24 = arith.constant 0 : index
    %c0_25 = arith.constant 0 : index
    %36 = vector.load %arg11[%c0_24, %c0_25] : memref<64x16xf32, #tpu.memory_space<vmem>>, vector<64x16xf32>
    tpu.vector_store %arg11[%c0_24, %c0_25], %35 {strides = array<i32>} : memref<64x16xf32, #tpu.memory_space<vmem>>, vector<64x16xf32>,
    return
  }
  func.func @transform_0(%arg0: i32) -> (i32, i32) {
    %c0_i32 = arith.constant 0 : i32
    %c0_i32_0 = arith.constant 0 : i32
    return %arg0, %c0_i32 : i32, i32
  }
  func.func @transform_1(%arg0: i32) -> (i32, i32) {
    %c0_i32 = arith.constant 0 : i32
    %c0_i32_0 = arith.constant 0 : i32
    %c0_i32_1 = arith.constant 0 : i32
    return %c0_i32, %c0_i32_0 : i32, i32
  }
  func.func @transform_2(%arg0: i32) -> (i32, i32) {
    %c0_i32 = arith.constant 0 : i32
    %c0_i32_0 = arith.constant 0 : i32
    %c0_i32_1 = arith.constant 0 : i32
    return %c0_i32, %c0_i32_0 : i32, i32
  }
  func.func @transform_3(%arg0: i32) -> (i32, i32) {
    %c0_i32 = arith.constant 0 : i32
    %c0_i32_0 = arith.constant 0 : i32
    %c0_i32_1 = arith.constant 0 : i32
    return %c0_i32, %c0_i32_0 : i32, i32
  }
  func.func @transform_4(%arg0: i32) -> (i32, i32) {
    %c0_i32 = arith.constant 0 : i32
    %c0_i32_0 = arith.constant 0 : i32
    %c0_i32_1 = arith.constant 0 : i32
    return %c0_i32, %c0_i32_0 : i32, i32
  }
  func.func @transform_5(%arg0: i32) -> (i32, i32) {
    %c0_i32 = arith.constant 0 : i32
    %c0_i32_0 = arith.constant 0 : i32
    %c0_i32_1 = arith.constant 0 : i32
    return %c0_i32, %c0_i32_0 : i32, i32
  }
  func.func @transform_6(%arg0: i32) -> (i32, i32) {
    %c0_i32 = arith.constant 0 : i32
    %c0_i32_0 = arith.constant 0 : i32
    %c0_i32_1 = arith.constant 0 : i32
    return %c0_i32, %c0_i32_0 : i32, i32
  }
  func.func @transform_7(%arg0: i32) -> (i32, i32) {
    %c0_i32 = arith.constant 0 : i32
    %c0_i32_0 = arith.constant 0 : i32
    %c0_i32_1 = arith.constant 0 : i32
    return %c0_i32, %c0_i32_0 : i32, i32
  }
  func.func @transform_8(%arg0: i32) -> (i32, i32) {
    %c0_i32 = arith.constant 0 : i32
    %c0_i32_0 = arith.constant 0 : i32
    %c0_i32_1 = arith.constant 0 : i32
    return %c0_i32, %c0_i32_0 : i32, i32
  }
  func.func @transform_9(%arg0: i32) -> (i32, i32) {
    %c0_i32 = arith.constant 0 : i32
    %c0_i32_0 = arith.constant 0 : i32
    %c0_i32_1 = arith.constant 0 : i32
    return %c0_i32, %c0_i32_0 : i32, i32
  }
  func.func @transform_10(%arg0: i32) -> (i32, i32) {
    %c0_i32 = arith.constant 0 : i32
    %c0_i32_0 = arith.constant 0 : i32
    return %arg0, %c0_i32 : i32, i32
  }
}

</mosaic_0001>

<bundles_post_ra>
// kernel: tpu_custom_call.1
= control target key start
LH: loop header
LB: loop body
LE: loop exit
PB: predicated region body
PF: predicated region fallthrough
CT: control target
= control target key end

     0   :  { %s1015_s13 = smov 0   ;;  %s1113_s0 = inlined_call_operand.vmem [shape: f32[128,32], index: 0, kind: input, shape index: {}]   ;;  %s1114_s1 = inlined_call_operand.vmem [shape: bf16[32,32], index: 1, kind: input, shape index: {}]   ;;  %s1115_s2 = inlined_call_operand.vmem [shape: f32[1,32], index: 2, kind: input, shape index: {}]   ;;  %s1116_s3 = inlined_call_operand.vmem [shape: bf16[32,32], index: 3, kind: input, shape index: {}]   ;;  %s1117_s4 = inlined_call_operand.vmem [shape: f32[1,32], index: 4, kind: input, shape index: {}]   ;;  %s1118_s5 = inlined_call_operand.vmem [shape: bf16[32,16], index: 5, kind: input, shape index: {}]   ;;  %s1119_s6 = inlined_call_operand.vmem [shape: f32[1,16], index: 6, kind: input, shape index: {}]   ;;  %s1120_s7 = inlined_call_operand.vmem [shape: f32[1,16], index: 7, kind: input, shape index: {}]   ;;  %s1121_s8 = inlined_call_operand.vmem [shape: f32[1,16], index: 8, kind: input, shape index: {}]   ;;  %s1122_s9 = inlined_call_operand.vmem [shape: f32[1,16], index: 9, kind: input, shape index: {}]   ;;  %s1123_s10 = inlined_call_operand.vmem [shape: f32[128,16], index: 10, kind: output, shape index: {}]  }
   0x1 LB: > { %s828_s14 = sadd.s32 4294967295, %s957_s13   ;;  %p832_p0 = scmp.ge.s32.totalorder %s957_s13, 1  ;;  %s957_s13 = sphi %s1015_s13, %s20_s13  }
   0x2   : > { %p313_p1 = scmp.lt.s32.totalorder %s957_s13, 3 }
   0x4   : > { %p314_p2 = pnand %p832_p0, %p313_p1 }
   0x5   : > { %v929_v0 = vld [vmem:[%s1114_s1] sm:$0xff] (!%p314_p2)   ;;  %s833_s17 = sshll.u32 (!%p314_p2), %s828_s14, 3  ;;  %v930_v1 = vld [vmem:[%s1114_s1 + $0x8] sm:$0xff] (!%p314_p2)   ;;  %vm399_vm0 = vcmask (!%p314_p2), 261120   ;;  %vm763_vm3 = vcmask (!%p314_p2), 130048  }
   0x6   : > { %317 = sbr.rel (%p314_p2) target bundleno = 708 (0x2c4), region = 60  ;;  %p352_p3 = scmp.lt.s32.totalorder (!%p314_p2), %s833_s17, 15  ;;  %880 = vmatprep.subr.bf16.mxu0 (!%p314_p2), %v929_v0  ;;  %916 = vmatprep.subr.bf16.mxu1 (!%p314_p2), %v929_v0  ;;  %v931_v14 = vld [vmem:[%s1116_s3] sm:$0xff] (!%p314_p2)   ;;  %v932_v15 = vld [vmem:[%s1116_s3 + $0x8] sm:$0xff] (!%p314_p2)  }
   0x7   : > { %881 = vmatpush3.bf16.msra.mxu0 (!%p314_p2), %v929_v0  ;;  %918 = vmatpush3.bf16.msra.mxu1 (!%p314_p2), %v929_v0  ;;  %v837_v16 = vld [vmem:[%s1115_s2] ss:$0 sm:$0xff] (!%p314_p2)  ;;  %v934_v46 = vld [vmem:[%s1118_s5 + $0x8] sm:$0xff] (!%p314_p2)  }
   0x8   : > { %882 = vmatprep.subr.bf16.mxu0 (!%p314_p2), %v930_v1  ;;  %917 = vmatprep.subr.bf16.mxu1 (!%p314_p2), %v930_v1  ;;  %v933_v45 = vld [vmem:[%s1118_s5] sm:$0xff] (!%p314_p2)  }
   0x9   : > { %v844_v47 = vld [vmem:[%s1117_s4] ss:$0 sm:$0xff] (!%p314_p2) }
   0xb   : > { %883 = vmatpush3.bf16.msra.mxu0 (!%p314_p2), %v930_v1  ;;  %919 = vmatpush3.bf16.msra.mxu1 (!%p314_p2), %v930_v1 }
   0xc   : > { %892 = vmatprep.subr.bf16.mxu1 (!%p314_p2), %v931_v14  ;;  %904 = vmatprep.subr.bf16.mxu0 (!%p314_p2), %v933_v45 }
   0xd   : > { %s1125_s17 = smov (!%p352_p3, %s833_s17), 15 }
   0xe   : > { %s834_s20 = sshll.u32 %s1125_s17, 3 }
   0xf   : > { %s355_s23 = scalar_lea.vmem %s1113_s0, %s834_s20  ;;  %s1084_s29 = scalar_lea.vmem %s1123_s10, %s834_s20 }
  0x10   : > { %v364_v2 = vld [vmem:[%s355_s23] sm:$0xff]  ;;  %v365_v3 = vld [vmem:[%s355_s23 + $0x8] sm:$0xff]  ;;  %v366_v4 = vld [vmem:[%s355_s23 + $0x10] sm:$0xff] }
  0x11   : > { %v372_v5 = vpack.c.bf16 %v365_v3, %v364_v2  ;;  %v367_v6 = vld [vmem:[%s355_s23 + $0x18] sm:$0xff]  ;;  %v368_v7 = vld [vmem:[%s355_s23 + $0x20] sm:$0xff]  ;;  %v369_v8 = vld [vmem:[%s355_s23 + $0x28] sm:$0xff] }
  0x12   : > { %v373_v9 = vpack.c.bf16 %v367_v6, %v366_v4  ;;  %v374_v10 = vpack.c.bf16 %v369_v8, %v368_v7  ;;  %v370_v11 = vld [vmem:[%s355_s23 + $0x30] sm:$0xff]  ;;  %v371_v12 = vld [vmem:[%s355_s23 + $0x38] sm:$0xff] }
  0x13   : > { %884 = vmatprep.mubr.msk.bf16.mxu0 %vm399_vm0, %v372_v5  ;;  %v375_v13 = vpack.c.bf16 %v371_v12, %v370_v11  ;;  %v851_v12 = vld [vmem:[%s1119_s6] ss:$0 sm:$0xff] }
  0x14   : > { %885 = vmatmul.mubr.msk.bf16.vlgmr.msra.gmra.mrb[0].mxu0 %vm399_vm0, %v373_v9  ;;  %888 = vmatprep.mubr.msk.bf16.mxu1 %vm399_vm0, %v374_v10 }
  0x15   : > { %889 = vmatmul.mubr.msk.bf16.vlgmr.msra.gmra.mrb[0].mxu1 %vm399_vm0, %v375_v13  ;;  %905 = vmatpush3.bf16.msra.mxu0 %v933_v45 }
  0x16   : > { %893 = vmatpush3.bf16.msra.mxu1 %v931_v14  ;;  %906 = vmatprep.subr.bf16.mxu0 %v934_v46  ;;  %v858_v14 = vld [vmem:[%s1120_s7] ss:$0 sm:$0xff] }
  0x17   : > { %894 = vmatprep.subr.bf16.mxu1 %v932_v15 }
  0x19   : > { %907 = vmatpush3.bf16.msra.mxu0 %v934_v46 }
  0x1a   : > { %895 = vmatpush3.bf16.msra.mxu1 %v932_v15 }
  0xe7   : > { %v886_v17 = vpop.f32.mrb[0].mxu0 }
  0xe8   : > { %v455_v18 = vadd.f32 %v886_v17, %v837_v16  ;;  %v446_v19 = vpop.f32.mrb[1].mxu0  ;;  %v890_v20 = vpop.f32.mrb[0].mxu1 }
  0xe9   : > { %v447_v21 = vadd.f32 %v837_v16, %v446_v19  ;;  %v887_v22 = vpop.f32.mrb[2].mxu0  ;;  %v471_v23 = vadd.f32 %v890_v20, %v837_v16  ;;  %v462_v24 = vpop.f32.mrb[1].mxu1 }
  0xea   : > { %v458_v25 = vadd.f32 %v887_v22, %v837_v16  ;;  %v449_v26 = vpop.f32.mrb[3].mxu0  ;;  %v463_v27 = vadd.f32 %v837_v16, %v462_v24  ;;  %v891_v28 = vpop.f32.mrb[2].mxu1  ;;  %v479_v33 = vmax.f32 %v455_v18, 0.0 }
  0xeb   : > { %v450_v29 = vadd.f32 %v837_v16, %v449_v26  ;;  %v483_v30 = vmax.f32 %v471_v23, 0.0  ;;  %v474_v31 = vadd.f32 %v891_v28, %v837_v16  ;;  %v465_v32 = vpop.f32.mrb[3].mxu1  ;;  %v477_v37 = vmax.f32 %v447_v21, 0.0  ;;  %v747_v23 = vld [vmem:[%s1121_s8] sm:$0x1] }
  0xec   : > { %v480_v34 = vmax.f32 %v458_v25, 0.0  ;;  %v481_v35 = vmax.f32 %v463_v27, 0.0  ;;  %v466_v36 = vadd.f32 %v837_v16, %v465_v32  ;;  %v750_v16 = vlaneseq }
  0xed   : > { %v478_v38 = vmax.f32 %v450_v29, 0.0  ;;  %v484_v39 = vmax.f32 %v474_v31, 0.0  ;;  %vm748_vm1 = vcmp.gt.f32.partialorder %v747_v23, 0.0 }
  0xee   : > { %v486_v40 = vpack.c.bf16 %v480_v34, %v479_v33  ;;  %v482_v41 = vmax.f32 %v466_v36, 0.0  ;;  %v751_v27 = vshrl.u32 %v750_v16, 7 }
  0xef   : > { %v485_v42 = vpack.c.bf16 %v478_v38, %v477_v37  ;;  %v488_v43 = vpack.c.bf16 %v484_v39, %v483_v30  ;;  %v959_v37 = vmov 0  }
  0xf0   : > { %v487_v44 = vpack.c.bf16 %v482_v41, %v481_v35  ;;  %v752_v34 = vsub.s32 0, %v751_v27  ;;  %v749_v38 = vsel %vm748_vm1, 1, %v959_v37 }
  0xf1   : > { %896 = vmatprep.mubr.msk.bf16.mxu1 %vm399_vm0, %v485_v42 }
  0xf2   : > { %897 = vmatmul.mubr.msk.bf16.vlgmr.msra.gmra.mrb[4].mxu1 %vm399_vm0, %v486_v40  ;;  %v753_v46 = vrot.slane %v749_v38, %v752_v34 }
  0xf3   : > { %900 = vmatprep.mubr.msk.bf16.mxu1 %vm399_vm0, %v487_v44 }
  0xf4   : > { %vm754_vm2 = vcmp.eq.s32.totalorder %v753_v46, 1 }
  0xfa   : > { %901 = vmatmul.mubr.msk.bf16.gmra.mrb[8].mxu1 %vm399_vm0, %v488_v43 }
 0x1c5   : > { %v898_v48 = vpop.f32.mrb[4].mxu1 }
 0x1c6   : > { %v567_v49 = vadd.f32 %v898_v48, %v844_v47  ;;  %v558_v50 = vpop.f32.mrb[5].mxu1 }
 0x1c7   : > { %v559_v51 = vadd.f32 %v844_v47, %v558_v50  ;;  %v899_v52 = vpop.f32.mrb[6].mxu1 }
 0x1c8   : > { %v570_v53 = vadd.f32 %v899_v52, %v844_v47  ;;  %v561_v54 = vpop.f32.mrb[7].mxu1  ;;  %v591_v56 = vmax.f32 %v567_v49, 0.0 }
 0x1c9   : > { %v562_v55 = vadd.f32 %v844_v47, %v561_v54  ;;  %v589_v58 = vmax.f32 %v559_v51, 0.0  ;;  %v859_v51 = vld [vmem:[%s1122_s9] ss:$0 sm:$0xff] }
 0x1ca   : > { %v592_v57 = vmax.f32 %v570_v53, 0.0 }
 0x1cb   : > { %v590_v59 = vmax.f32 %v562_v55, 0.0 }
 0x1cc   : > { %v598_v60 = vpack.c.bf16 %v592_v57, %v591_v56 }
 0x1cd   : > { %v597_v61 = vpack.c.bf16 %v590_v59, %v589_v58  ;;  %v902_v62 = vpop.f32.mrb[8].mxu1 }
 0x1ce   : > { %v583_v63 = vadd.f32 %v902_v62, %v844_v47  ;;  %v574_v0 = vpop.f32.mrb[9].mxu1 }
 0x1cf   : > { %v575_v1 = vadd.f32 %v844_v47, %v574_v0  ;;  %v903_v2 = vpop.f32.mrb[10].mxu1  ;;  %908 = vmatprep.mubr.msk.bf16.mxu0 %vm399_vm0, %v597_v61 }
 0x1d0   : > { %v586_v3 = vadd.f32 %v903_v2, %v844_v47  ;;  %v577_v4 = vpop.f32.mrb[11].mxu1  ;;  %909 = vmatmul.mubr.msk.bf16.vlgmr.msra.gmra.mrb[4].mxu0 %vm399_vm0, %v598_v60  ;;  %v595_v6 = vmax.f32 %v583_v63, 0.0 }
 0x1d1   : > { %v578_v5 = vadd.f32 %v844_v47, %v577_v4  ;;  %v593_v8 = vmax.f32 %v575_v1, 0.0 }
 0x1d2   : > { %v596_v7 = vmax.f32 %v586_v3, 0.0 }
 0x1d3   : > { %v594_v9 = vmax.f32 %v578_v5, 0.0 }
 0x1d4   : > { %v600_v10 = vpack.c.bf16 %v596_v7, %v595_v6 }
 0x1d5   : > { %v599_v11 = vpack.c.bf16 %v594_v9, %v593_v8 }
 0x1d7   : > { %912 = vmatprep.mubr.msk.bf16.mxu0 %vm399_vm0, %v599_v11 }
 0x1d8   : > { %913 = vmatmul.mubr.msk.bf16.gmra.mrb[8].mxu0 %vm399_vm0, %v600_v10 }
 0x2a3   : > { %v910_v13 = vpop.f32.mrb[4].mxu0 }
 0x2a4   : > { %v679_v15 = vadd.f32 %v910_v13, %v851_v12  ;;  %v670_v17 = vpop.f32.mrb[5].mxu0 }
 0x2a5   : > { %v671_v18 = vadd.f32 %v851_v12, %v670_v17  ;;  %v911_v19 = vpop.f32.mrb[6].mxu0 }
 0x2a6   : > { %v710_v20 = vmul.f32 %v858_v14, %v679_v15  ;;  %v682_v21 = vadd.f32 %v911_v19, %v851_v12  ;;  %v673_v22 = vpop.f32.mrb[7].mxu0 }
 0x2a7   : > { %v708_v24 = vmul.f32 %v858_v14, %v671_v18  ;;  %v674_v25 = vadd.f32 %v851_v12, %v673_v22 }
 0x2a8   : > { %v720_v26 = vmul.f32 1.442695, %v710_v20  ;;  %v711_v28 = vmul.f32 %v858_v14, %v682_v21 }
 0x2a9   : > { %v716_v29 = vmul.f32 1.442695, %v708_v24  ;;  %v709_v30 = vmul.f32 %v858_v14, %v674_v25 }
 0x2aa   : > { %935 = vpow2.f32 %v720_v26  ;;  %v722_v31 = vmul.f32 1.442695, %v711_v28 }
 0x2ab   : > { %937 = vpow2.f32 %v716_v29  ;;  %v718_v32 = vmul.f32 1.442695, %v709_v30  ;;  %v914_v33 = vpop.f32.mrb[8].mxu0 }
 0x2ac   : > { %939 = vpow2.f32 %v722_v31  ;;  %v695_v35 = vadd.f32 %v914_v33, %v851_v12  ;;  %v686_v36 = vpop.f32.mrb[9].mxu0 }
 0x2ad   : > { %941 = vpow2.f32 %v718_v32  ;;  %v687_v39 = vadd.f32 %v851_v12, %v686_v36  ;;  %v915_v40 = vpop.f32.mrb[10].mxu0 }
 0x2ae   : > { %v714_v41 = vmul.f32 %v858_v14, %v695_v35  ;;  %v698_v42 = vadd.f32 %v915_v40, %v851_v12  ;;  %v689_v43 = vpop.f32.mrb[11].mxu0 }
 0x2af   : > { %v712_v44 = vmul.f32 %v858_v14, %v687_v39  ;;  %v690_v45 = vadd.f32 %v851_v12, %v689_v43 }
 0x2b0   : > { %v728_v47 = vmul.f32 1.442695, %v714_v41  ;;  %v715_v48 = vmul.f32 %v858_v14, %v698_v42 }
 0x2b1   : > { %v724_v49 = vmul.f32 1.442695, %v712_v44  ;;  %v713_v50 = vmul.f32 %v858_v14, %v690_v45 }
 0x2b2   : > { %943 = vpow2.f32 %v728_v47  ;;  %v730_v52 = vmul.f32 1.442695, %v715_v48 }
 0x2b3   : > { %945 = vpow2.f32 %v724_v49  ;;  %v726_v53 = vmul.f32 1.442695, %v713_v50 }
 0x2b4   : > { %v936_v54 = vpop.eup %935  ;;  %947 = vpow2.f32 %v730_v52 }
 0x2b5   : > { %v938_v55 = vpop.eup %937  ;;  %v741_v56 = vmax.f32 %v936_v54, %v859_v51  ;;  %949 = vpow2.f32 %v726_v53 }
 0x2b6   : > { %v940_v57 = vpop.eup %939  ;;  %v739_v58 = vmax.f32 %v938_v55, %v859_v51 }
 0x2b7   : > { %v942_v59 = vpop.eup %941  ;;  %v757_v60 = vsel %vm754_vm2, %v741_v56, %v679_v15  ;;  %v742_v61 = vmax.f32 %v940_v57, %v859_v51 }
 0x2b8   : > { %766 = vst.msk [vmem:[%s1084_s29 + $0x10] sm:$0xff] %vm763_vm3, %v757_v60  ;;  %v755_v62 = vsel %vm754_vm2, %v739_v58, %v671_v18  ;;  %v740_v63 = vmax.f32 %v942_v59, %v859_v51 }
 0x2b9   : > { %764 = vst.msk [vmem:[%s1084_s29] sm:$0xff] %vm763_vm3, %v755_v62  ;;  %v758_v0 = vsel %vm754_vm2, %v742_v61, %v682_v21 }
 0x2ba   : > { %767 = vst.msk [vmem:[%s1084_s29 + $0x18] sm:$0xff] %vm763_vm3, %v758_v0  ;;  %v756_v1 = vsel %vm754_vm2, %v740_v63, %v674_v25 }
 0x2bb   : > { %765 = vst.msk [vmem:[%s1084_s29 + $0x8] sm:$0xff] %vm763_vm3, %v756_v1 }
 0x2bc   : > { %v944_v2 = vpop.eup %943 }
 0x2bd   : > { %v946_v3 = vpop.eup %945  ;;  %v745_v4 = vmax.f32 %v944_v2, %v859_v51 }
 0x2be   : > { %v948_v5 = vpop.eup %947  ;;  %v743_v6 = vmax.f32 %v946_v3, %v859_v51 }
 0x2bf   : > { %v950_v7 = vpop.eup %949  ;;  %v761_v8 = vsel %vm754_vm2, %v745_v4, %v695_v35  ;;  %v746_v9 = vmax.f32 %v948_v5, %v859_v51 }
 0x2c0   : > { %770 = vst.msk [vmem:[%s1084_s29 + $0x30] sm:$0xff] %vm763_vm3, %v761_v8  ;;  %v759_v10 = vsel %vm754_vm2, %v743_v6, %v687_v39  ;;  %v744_v11 = vmax.f32 %v950_v7, %v859_v51 }
 0x2c1   : > { %768 = vst.msk [vmem:[%s1084_s29 + $0x20] sm:$0xff] %vm763_vm3, %v759_v10  ;;  %v762_v12 = vsel %vm754_vm2, %v746_v9, %v698_v42 }
 0x2c2   : > { %771 = vst.msk [vmem:[%s1084_s29 + $0x38] sm:$0xff] %vm763_vm3, %v762_v12  ;;  %v760_v13 = vsel %vm754_vm2, %v744_v11, %v690_v45 }
 0x2c3   : > { %769 = vst.msk [vmem:[%s1084_s29 + $0x28] sm:$0xff] %vm763_vm3, %v760_v13 }
 0x2c4 PF: > { %s20_s13 = sadd.s32 1, %s957_s13  }
 0x2c5   : > { %p17_p4 = scmp.ge.s32.totalorder %s20_s13, 4  }
 0x2c7   :  { %19 = sbr.rel (!%p17_p4) target bundleno = 1 (0x1), region = 90 }

</bundles_post_ra>
